<compile_context>
chip_gen: v6e
topology: v6e:2x2x1
jax: 0.10.0
libtpu: 0.0.40
codegen_flags: <defaults>
</compile_context>

<pallas_src>
import functools
import math

import jax
import jax.numpy as jnp
from jax import lax
from jax.experimental import pallas as pl
from jax.experimental.pallas import tpu as pltpu


# ----------------------------------------------------------------------------- kernel
def _dws_kernel(x_ref, wd_ref, bd_ref, wp_ref, bp_ref, o_ref,
                *, K, stride, Ws, L, C_in, C_out, use_mxu):
    """One batch element per grid step, channel-on-sublane / spatial-on-lane.

    x_ref : (1, s*s, C_in, FLAT)  phase-split, zero-padded input, spatial flattened
    wd_ref: (C_in, K*K)           depthwise weights (taps on lanes)
    bd_ref: (C_in, 1)             depthwise bias
    wp_ref: (C_out, C_in)         pointwise weights
    bp_ref: (C_out, 1)            pointwise bias
    o_ref : (1, C_out, L)         L = H_out*Ws flattened output (row stride = Ws)
    """
    s = stride

    # ---- weights/biases: single VMEM load each, sliced as values afterwards ----
    wd = wd_ref[...].astype(jnp.float32)              # (C_in, K*K)
    bd = bd_ref[...].astype(jnp.float32)              # (C_in, 1)
    bp = bp_ref[...].astype(jnp.float32)              # (C_out, 1)

    # ---- depthwise KxK conv: K*K statically-offset lane-window FMAs on the VPU ----
    # fold the depthwise bias into the accumulator init (hoisted broadcast).
    acc = jnp.broadcast_to(bd, (C_in, L))
    for dy in range(K):
        for dx in range(K):
            ph = (dy % s) * s + (dx % s)              # phase plane (space-to-depth)
            off = (dy // s) * Ws + (dx // s)          # static flat lane offset
            patch = x_ref[0, ph, :, pl.ds(off, L)].astype(jnp.float32)   # (C_in, L)
            w_tap = wd[:, dy * K + dx: dy * K + dx + 1]                  # (C_in, 1)
            acc = acc + patch * w_tap                 # lane-broadcast FMA

    h = jnp.maximum(acc, 0.0)                         # ReLU

    # ---- pointwise 1x1 conv over channels ----
    if use_mxu:
        # large channel counts: real MXU matmul (native-dtype operands, f32 accumulate)
        y = jnp.dot(wp_ref[...], h.astype(wp_ref.dtype),
                    preferred_element_type=jnp.float32)
    else:
        # tiny channel counts: C_in VPU broadcast-FMAs beat a ~1%-utilized MXU pass
        wp = wp_ref[...].astype(jnp.float32)          # (C_out, C_in)
        y = jnp.zeros((C_out, L), jnp.float32)
        for ci in range(C_in):
            y = y + wp[:, ci:ci + 1] * h[ci:ci + 1, :]
    y = jnp.maximum(y + bp, 0.0)                      # ReLU

    o_ref[0] = y.astype(o_ref.dtype)                  # lane-dense NCHW-order store


# ---------------------------------------------------------------------------- wrapper
def dws_conv2d(x_nchw, w_depth, b_depth, w_point, b_point, *, stride):
    """x_nchw: (N, C_in, H, W); w_depth: (C_in, 1, K, K); w_point: (C_out, C_in, 1, 1)."""
    assert stride in (1, 2), f"Stride value {stride} not supported!"
    N, C_in, H, W = x_nchw.shape
    K = w_depth.shape[-1]
    C_out = w_point.shape[0]
    s = stride

    # padding: torch 'same' for stride=1, the module's explicit rule for stride=2
    if s == 1:
        total = K - 1
        pad_t = total // 2
        pad_b = total - pad_t
        pad_l, pad_r = pad_t, pad_b
    else:
        p1 = K // 2 - 1
        if K % 2 != 0:
            p1 = (K + 1) // 2 - 1
        pad_t = pad_b = pad_l = pad_r = p1

    Hp = H + pad_t + pad_b
    Wp = W + pad_l + pad_r
    H_out = (Hp - K) // s + 1
    W_out = (Wp - K) // s + 1

    # phase-split (space-to-depth) geometry
    rmax = (K - 1) // s                       # max coarse row offset of any tap
    Ws = -(-Wp // s)                          # coarse row width = lane row stride
    Hs_data = -(-Hp // s)
    L = H_out * Ws                            # flattened output length per image
    # enough zero-padded coarse rows that every tap window of length L stays in bounds
    Hs_alloc = max(Hs_data, H_out + rmax) + 1
    FLAT = Hs_alloc * Ws

    # single pad (conv padding + bottom/right alloc slack), stays in NCHW
    x = jnp.pad(x_nchw, ((0, 0), (0, 0),
                         (pad_t, Hs_alloc * s - H - pad_t),
                         (pad_l, Ws * s - W - pad_l)))
    # space-to-depth phase split; for stride=1 this is a free reshape (no data movement)
    x = x.reshape(N, C_in, Hs_alloc, s, Ws, s)
    x = x.transpose(0, 3, 5, 1, 2, 4)                 # (N, s, s, C_in, Hs_alloc, Ws)
    x = x.reshape(N, s * s, C_in, FLAT)

    # weights / biases in channel-on-sublane layout (consumed directly from NCHW params)
    wd = w_depth[:, 0, :, :].reshape(C_in, K * K)     # (C_in, K*K)
    bd = b_depth.reshape(C_in, 1)
    wp = w_point[:, :, 0, 0]                          # (C_out, C_in)
    bp = b_point.reshape(C_out, 1)

    kernel = functools.partial(_dws_kernel, K=K, stride=s, Ws=Ws, L=L,
                               C_in=C_in, C_out=C_out, use_mxu=C_in >= 64)

    out_flat = pl.pallas_call(
        kernel,
        out_shape=jax.ShapeDtypeStruct((N, C_out, L), x_nchw.dtype),
        grid_spec=pltpu.PrefetchScalarGridSpec(
            num_scalar_prefetch=0,
            grid=(N,),
            in_specs=[
                pl.BlockSpec((1, s * s, C_in, FLAT), lambda n: (n, 0, 0, 0)),
                pl.BlockSpec((C_in, K * K), lambda n: (0, 0)),
                pl.BlockSpec((C_in, 1), lambda n: (0, 0)),
                pl.BlockSpec((C_out, C_in), lambda n: (0, 0)),
                pl.BlockSpec((C_out, 1), lambda n: (0, 0)),
            ],
            out_specs=pl.BlockSpec((1, C_out, L), lambda n: (n, 0, 0)),
        ),
        compiler_params=pltpu.CompilerParams(
            dimension_semantics=("parallel",),
            vmem_limit_bytes=32 * 1024 * 1024,
        ),
    )(x, wd, bd, wp, bp)

    # (N, C_out, H_out*Ws) -> NCHW: free reshape, then drop the Ws-W_out junk columns
    return out_flat.reshape(N, C_out, H_out, Ws)[:, :, :, :W_out]


# ----------------------------------------------------------------------- pure-JAX ref
def dws_ref(x, w_depth, b_depth, w_point, b_point, *, stride):
    C_in = x.shape[1]
    K = w_depth.shape[-1]
    if stride == 1:
        total = K - 1
        pad = (total // 2, total - total // 2)
    else:
        p1 = K // 2 - 1 if K % 2 == 0 else (K + 1) // 2 - 1
        pad = (p1, p1)
    y = lax.conv_general_dilated(
        x, w_depth, window_strides=(stride, stride), padding=[pad, pad],
        feature_group_count=C_in, dimension_numbers=("NCHW", "OIHW", "NCHW"))
    y = jnp.maximum(y + b_depth[None, :, None, None], 0.0)
    z = lax.conv_general_dilated(
        y, w_point, window_strides=(1, 1), padding=[(0, 0), (0, 0)],
        dimension_numbers=("NCHW", "OIHW", "NCHW"))
    return jnp.maximum(z + b_point[None, :, None, None], 0.0)


# -------------------------------------------------------------------- deterministic init
def orthogonal_init(key, shape, gain):
    """Mimics torch.nn.init.orthogonal_: QR-orthogonal on (shape[0], prod(shape[1:]))."""
    rows = shape[0]
    cols = math.prod(shape[1:])
    a = jax.random.normal(key, (max(rows, cols), min(rows, cols)), jnp.float32)
    q, r = jnp.linalg.qr(a)
    q = q * jnp.sign(jnp.diagonal(r))
    if rows < cols:
        q = q.T
    return (gain * q[:rows, :cols]).reshape(shape).astype(jnp.float32)


# --------------------------------------------------------------------------------- main
if __name__ == "__main__":
    key = jax.random.PRNGKey(0)
    N, H, W = 2, 16, 16
    configs = [
        dict(C_in=4, C_out=8, K=3, stride=1),   # stride=1, 'same' padding
        dict(C_in=4, C_out=6, K=4, stride=2),   # stride=2, even kernel
    ]

    gain = math.sqrt(2.0)
    all_ok = True
    for cfg in configs:
        C_in, C_out, K, stride = cfg["C_in"], cfg["C_out"], cfg["K"], cfg["stride"]
        key, k1, k2, kb1, kb2, kx = jax.random.split(key, 6)
        w_depth = orthogonal_init(k1, (C_in, 1, K, K), gain)
        b_depth = 0.1 * jax.random.normal(kb1, (C_in,), jnp.float32)
        w_point = orthogonal_init(k2, (C_out, C_in, 1, 1), gain)
        b_point = 0.1 * jax.random.normal(kb2, (C_out,), jnp.float32)
        x = jax.random.normal(kx, (N, C_in, H, W), jnp.float32)

        y = dws_conv2d(x, w_depth, b_depth, w_point, b_point, stride=stride)
        y = jax.block_until_ready(y)
        y_ref = dws_ref(x, w_depth, b_depth, w_point, b_point, stride=stride)
        if not bool(jnp.allclose(y, y_ref, atol=1e-4, rtol=1e-4)):
            all_ok = False

    if all_ok:
        print("KERNEL_OK")
    else:
        print("MISMATCH")
</pallas_src>

<mosaic_0001>
module attributes {stable_mosaic.version = 11 : i64} {
  func.func @_dws_kernel(%arg0: i32, %arg1: memref<1x1x4x342xf32, #tpu.memory_space<vmem>>, %arg2: memref<4x9xf32, #tpu.memory_space<vmem>>, %arg3: memref<4x1xf32, #tpu.memory_space<vmem>>, %arg4: memref<8x4xf32, #tpu.memory_space<vmem>>, %arg5: memref<8x1xf32, #tpu.memory_space<vmem>>, %arg6: memref<1x8x288xf32, #tpu.memory_space<vmem>>) attributes {dimension_semantics = [#tpu.dimension_semantics<parallel>], iteration_bounds = array<i64: 2>, scalar_prefetch = 0 : i64, scratch_operands = 0 : i64, tpu.core_type = #tpu.core_type<tc>, window_params = [{transform_indices = @transform_0, window_bounds = array<i64: 1, 1, 4, 342>}, {pipeline_mode = #tpu.pipeline_mode<synchronous>, transform_indices = @transform_1, window_bounds = array<i64: 4, 9>}, {pipeline_mode = #tpu.pipeline_mode<synchronous>, transform_indices = @transform_2, window_bounds = array<i64: 4, 1>}, {pipeline_mode = #tpu.pipeline_mode<synchronous>, transform_indices = @transform_3, window_bounds = array<i64: 8, 4>}, {pipeline_mode = #tpu.pipeline_mode<synchronous>, transform_indices = @transform_4, window_bounds = array<i64: 8, 1>}, {transform_indices = @transform_5, window_bounds = array<i64: 1, 8, 288>}]} {
    %c0 = arith.constant 0 : index
    %c0_0 = arith.constant 0 : index
    %0 = vector.load %arg2[%c0, %c0_0] : memref<4x9xf32, #tpu.memory_space<vmem>>, vector<4x9xf32>
    %c0_1 = arith.constant 0 : index
    %c0_2 = arith.constant 0 : index
    %1 = vector.load %arg3[%c0_1, %c0_2] : memref<4x1xf32, #tpu.memory_space<vmem>>, vector<4x1xf32>
    %c0_3 = arith.constant 0 : index
    %c0_4 = arith.constant 0 : index
    %2 = vector.load %arg5[%c0_3, %c0_4] : memref<8x1xf32, #tpu.memory_space<vmem>>, vector<8x1xf32>
    %3 = vector.shape_cast %1 : vector<4x1xf32> to vector<4x1xf32>
    %4 = vector.broadcast %3 : vector<4x1xf32> to vector<4x288xf32>
    %c0_5 = arith.constant 0 : index
    %c0_6 = arith.constant 0 : index
    %c0_7 = arith.constant 0 : index
    %c0_8 = arith.constant 0 : index
    %5 = vector.load %arg1[%c0_5, %c0_6, %c0_7, %c0_8] : memref<1x1x4x342xf32, #tpu.memory_space<vmem>>, vector<1x1x4x288xf32>
    %6 = vector.shape_cast %5 : vector<1x1x4x288xf32> to vector<4x288xf32>
    %7 = vector.extract_strided_slice %0 {offsets = [0, 0], sizes = [4, 1], strides = [1, 1]} : vector<4x9xf32> to vector<4x1xf32>
    %8 = vector.broadcast %7 : vector<4x1xf32> to vector<4x288xf32>
    %9 = arith.mulf %6, %8 : vector<4x288xf32>
    %10 = arith.addf %4, %9 : vector<4x288xf32>
    %c0_9 = arith.constant 0 : index
    %c0_10 = arith.constant 0 : index
    %c0_11 = arith.constant 0 : index
    %c1 = arith.constant 1 : index
    %11 = vector.load %arg1[%c0_9, %c0_10, %c0_11, %c1] : memref<1x1x4x342xf32, #tpu.memory_space<vmem>>, vector<1x1x4x288xf32>
    %12 = vector.shape_cast %11 : vector<1x1x4x288xf32> to vector<4x288xf32>
    %13 = vector.extract_strided_slice %0 {offsets = [0, 1], sizes = [4, 1], strides = [1, 1]} : vector<4x9xf32> to vector<4x1xf32>
    %14 = vector.broadcast %13 : vector<4x1xf32> to vector<4x288xf32>
    %15 = arith.mulf %12, %14 : vector<4x288xf32>
    %16 = arith.addf %10, %15 : vector<4x288xf32>
    %c0_12 = arith.constant 0 : index
    %c0_13 = arith.constant 0 : index
    %c0_14 = arith.constant 0 : index
    %c2 = arith.constant 2 : index
    %17 = vector.load %arg1[%c0_12, %c0_13, %c0_14, %c2] : memref<1x1x4x342xf32, #tpu.memory_space<vmem>>, vector<1x1x4x288xf32>
    %18 = vector.shape_cast %17 : vector<1x1x4x288xf32> to vector<4x288xf32>
    %19 = vector.extract_strided_slice %0 {offsets = [0, 2], sizes = [4, 1], strides = [1, 1]} : vector<4x9xf32> to vector<4x1xf32>
    %20 = vector.broadcast %19 : vector<4x1xf32> to vector<4x288xf32>
    %21 = arith.mulf %18, %20 : vector<4x288xf32>
    %22 = arith.addf %16, %21 : vector<4x288xf32>
    %c0_15 = arith.constant 0 : index
    %c0_16 = arith.constant 0 : index
    %c0_17 = arith.constant 0 : index
    %c18 = arith.constant 18 : index
    %23 = vector.load %arg1[%c0_15, %c0_16, %c0_17, %c18] : memref<1x1x4x342xf32, #tpu.memory_space<vmem>>, vector<1x1x4x288xf32>
    %24 = vector.shape_cast %23 : vector<1x1x4x288xf32> to vector<4x288xf32>
    %25 = vector.extract_strided_slice %0 {offsets = [0, 3], sizes = [4, 1], strides = [1, 1]} : vector<4x9xf32> to vector<4x1xf32>
    %26 = vector.broadcast %25 : vector<4x1xf32> to vector<4x288xf32>
    %27 = arith.mulf %24, %26 : vector<4x288xf32>
    %28 = arith.addf %22, %27 : vector<4x288xf32>
    %c0_18 = arith.constant 0 : index
    %c0_19 = arith.constant 0 : index
    %c0_20 = arith.constant 0 : index
    %c19 = arith.constant 19 : index
    %29 = vector.load %arg1[%c0_18, %c0_19, %c0_20, %c19] : memref<1x1x4x342xf32, #tpu.memory_space<vmem>>, vector<1x1x4x288xf32>
    %30 = vector.shape_cast %29 : vector<1x1x4x288xf32> to vector<4x288xf32>
    %31 = vector.extract_strided_slice %0 {offsets = [0, 4], sizes = [4, 1], strides = [1, 1]} : vector<4x9xf32> to vector<4x1xf32>
    %32 = vector.broadcast %31 : vector<4x1xf32> to vector<4x288xf32>
    %33 = arith.mulf %30, %32 : vector<4x288xf32>
    %34 = arith.addf %28, %33 : vector<4x288xf32>
    %c0_21 = arith.constant 0 : index
    %c0_22 = arith.constant 0 : index
    %c0_23 = arith.constant 0 : index
    %c20 = arith.constant 20 : index
    %35 = vector.load %arg1[%c0_21, %c0_22, %c0_23, %c20] : memref<1x1x4x342xf32, #tpu.memory_space<vmem>>, vector<1x1x4x288xf32>
    %36 = vector.shape_cast %35 : vector<1x1x4x288xf32> to vector<4x288xf32>
    %37 = vector.extract_strided_slice %0 {offsets = [0, 5], sizes = [4, 1], strides = [1, 1]} : vector<4x9xf32> to vector<4x1xf32>
    %38 = vector.broadcast %37 : vector<4x1xf32> to vector<4x288xf32>
    %39 = arith.mulf %36, %38 : vector<4x288xf32>
    %40 = arith.addf %34, %39 : vector<4x288xf32>
    %c0_24 = arith.constant 0 : index
    %c0_25 = arith.constant 0 : index
    %c0_26 = arith.constant 0 : index
    %c36 = arith.constant 36 : index
    %41 = vector.load %arg1[%c0_24, %c0_25, %c0_26, %c36] : memref<1x1x4x342xf32, #tpu.memory_space<vmem>>, vector<1x1x4x288xf32>
    %42 = vector.shape_cast %41 : vector<1x1x4x288xf32> to vector<4x288xf32>
    %43 = vector.extract_strided_slice %0 {offsets = [0, 6], sizes = [4, 1], strides = [1, 1]} : vector<4x9xf32> to vector<4x1xf32>
    %44 = vector.broadcast %43 : vector<4x1xf32> to vector<4x288xf32>
    %45 = arith.mulf %42, %44 : vector<4x288xf32>
    %46 = arith.addf %40, %45 : vector<4x288xf32>
    %c0_27 = arith.constant 0 : index
    %c0_28 = arith.constant 0 : index
    %c0_29 = arith.constant 0 : index
    %c37 = arith.constant 37 : index
    %47 = vector.load %arg1[%c0_27, %c0_28, %c0_29, %c37] : memref<1x1x4x342xf32, #tpu.memory_space<vmem>>, vector<1x1x4x288xf32>
    %48 = vector.shape_cast %47 : vector<1x1x4x288xf32> to vector<4x288xf32>
    %49 = vector.extract_strided_slice %0 {offsets = [0, 7], sizes = [4, 1], strides = [1, 1]} : vector<4x9xf32> to vector<4x1xf32>
    %50 = vector.broadcast %49 : vector<4x1xf32> to vector<4x288xf32>
    %51 = arith.mulf %48, %50 : vector<4x288xf32>
    %52 = arith.addf %46, %51 : vector<4x288xf32>
    %c0_30 = arith.constant 0 : index
    %c0_31 = arith.constant 0 : index
    %c0_32 = arith.constant 0 : index
    %c38 = arith.constant 38 : index
    %53 = vector.load %arg1[%c0_30, %c0_31, %c0_32, %c38] : memref<1x1x4x342xf32, #tpu.memory_space<vmem>>, vector<1x1x4x288xf32>
    %54 = vector.shape_cast %53 : vector<1x1x4x288xf32> to vector<4x288xf32>
    %55 = vector.extract_strided_slice %0 {offsets = [0, 8], sizes = [4, 1], strides = [1, 1]} : vector<4x9xf32> to vector<4x1xf32>
    %56 = vector.broadcast %55 : vector<4x1xf32> to vector<4x288xf32>
    %57 = arith.mulf %54, %56 : vector<4x288xf32>
    %58 = arith.addf %52, %57 : vector<4x288xf32>
    %cst = arith.constant 0.000000e+00 : f32
    %59 = vector.broadcast %cst : f32 to vector<4x288xf32>
    %60 = arith.maximumf %58, %59 : vector<4x288xf32>
    %c0_33 = arith.constant 0 : index
    %c0_34 = arith.constant 0 : index
    %61 = vector.load %arg4[%c0_33, %c0_34] : memref<8x4xf32, #tpu.memory_space<vmem>>, vector<8x4xf32>
    %cst_35 = arith.constant 0.000000e+00 : f32
    %62 = vector.broadcast %cst_35 : f32 to vector<8x288xf32>
    %63 = vector.extract_strided_slice %61 {offsets = [0, 0], sizes = [8, 1], strides = [1, 1]} : vector<8x4xf32> to vector<8x1xf32>
    %64 = vector.extract_strided_slice %60 {offsets = [0, 0], sizes = [1, 288], strides = [1, 1]} : vector<4x288xf32> to vector<1x288xf32>
    %65 = vector.broadcast %63 : vector<8x1xf32> to vector<8x288xf32>
    %66 = vector.broadcast %64 : vector<1x288xf32> to vector<8x288xf32>
    %67 = arith.mulf %65, %66 : vector<8x288xf32>
    %68 = arith.addf %62, %67 : vector<8x288xf32>
    %69 = vector.extract_strided_slice %61 {offsets = [0, 1], sizes = [8, 1], strides = [1, 1]} : vector<8x4xf32> to vector<8x1xf32>
    %70 = vector.extract_strided_slice %60 {offsets = [1, 0], sizes = [1, 288], strides = [1, 1]} : vector<4x288xf32> to vector<1x288xf32>
    %71 = vector.broadcast %69 : vector<8x1xf32> to vector<8x288xf32>
    %72 = vector.broadcast %70 : vector<1x288xf32> to vector<8x288xf32>
    %73 = arith.mulf %71, %72 : vector<8x288xf32>
    %74 = arith.addf %68, %73 : vector<8x288xf32>
    %75 = vector.extract_strided_slice %61 {offsets = [0, 2], sizes = [8, 1], strides = [1, 1]} : vector<8x4xf32> to vector<8x1xf32>
    %76 = vector.extract_strided_slice %60 {offsets = [2, 0], sizes = [1, 288], strides = [1, 1]} : vector<4x288xf32> to vector<1x288xf32>
    %77 = vector.broadcast %75 : vector<8x1xf32> to vector<8x288xf32>
    %78 = vector.broadcast %76 : vector<1x288xf32> to vector<8x288xf32>
    %79 = arith.mulf %77, %78 : vector<8x288xf32>
    %80 = arith.addf %74, %79 : vector<8x288xf32>
    %81 = vector.extract_strided_slice %61 {offsets = [0, 3], sizes = [8, 1], strides = [1, 1]} : vector<8x4xf32> to vector<8x1xf32>
    %82 = vector.extract_strided_slice %60 {offsets = [3, 0], sizes = [1, 288], strides = [1, 1]} : vector<4x288xf32> to vector<1x288xf32>
    %83 = vector.broadcast %81 : vector<8x1xf32> to vector<8x288xf32>
    %84 = vector.broadcast %82 : vector<1x288xf32> to vector<8x288xf32>
    %85 = arith.mulf %83, %84 : vector<8x288xf32>
    %86 = arith.addf %80, %85 : vector<8x288xf32>
    %87 = vector.broadcast %2 : vector<8x1xf32> to vector<8x288xf32>
    %88 = arith.addf %86, %87 : vector<8x288xf32>
    %cst_36 = arith.constant 0.000000e+00 : f32
    %89 = vector.broadcast %cst_36 : f32 to vector<8x288xf32>
    %90 = arith.maximumf %88, %89 : vector<8x288xf32>
    %c0_37 = arith.constant 0 : index
    %c0_38 = arith.constant 0 : index
    %c0_39 = arith.constant 0 : index
    %91 = vector.load %arg6[%c0_37, %c0_38, %c0_39] : memref<1x8x288xf32, #tpu.memory_space<vmem>>, vector<1x8x288xf32>
    %92 = vector.shape_cast %91 : vector<1x8x288xf32> to vector<8x288xf32>
    %93 = vector.shape_cast %90 : vector<8x288xf32> to vector<1x8x288xf32>
    tpu.vector_store %arg6[%c0_37, %c0_38, %c0_39], %93 {strides = array<i32>} : memref<1x8x288xf32, #tpu.memory_space<vmem>>, vector<1x8x288xf32>,
    return
  }
  func.func @transform_0(%arg0: i32) -> (i32, i32, i32, i32) {
    %c0_i32 = arith.constant 0 : i32
    %c0_i32_0 = arith.constant 0 : i32
    %c0_i32_1 = arith.constant 0 : i32
    %c0_i32_2 = arith.constant 0 : i32
    return %arg0, %c0_i32, %c0_i32_0, %c0_i32_1 : i32, i32, i32, i32
  }
  func.func @transform_1(%arg0: i32) -> (i32, i32) {
    %c0_i32 = arith.constant 0 : i32
    %c0_i32_0 = arith.constant 0 : i32
    %c0_i32_1 = arith.constant 0 : i32
    return %c0_i32, %c0_i32_0 : i32, i32
  }
  func.func @transform_2(%arg0: i32) -> (i32, i32) {
    %c0_i32 = arith.constant 0 : i32
    %c0_i32_0 = arith.constant 0 : i32
    %c0_i32_1 = arith.constant 0 : i32
    return %c0_i32, %c0_i32_0 : i32, i32
  }
  func.func @transform_3(%arg0: i32) -> (i32, i32) {
    %c0_i32 = arith.constant 0 : i32
    %c0_i32_0 = arith.constant 0 : i32
    %c0_i32_1 = arith.constant 0 : i32
    return %c0_i32, %c0_i32_0 : i32, i32
  }
  func.func @transform_4(%arg0: i32) -> (i32, i32) {
    %c0_i32 = arith.constant 0 : i32
    %c0_i32_0 = arith.constant 0 : i32
    %c0_i32_1 = arith.constant 0 : i32
    return %c0_i32, %c0_i32_0 : i32, i32
  }
  func.func @transform_5(%arg0: i32) -> (i32, i32, i32) {
    %c0_i32 = arith.constant 0 : i32
    %c0_i32_0 = arith.constant 0 : i32
    %c0_i32_1 = arith.constant 0 : i32
    return %arg0, %c0_i32, %c0_i32_0 : i32, i32, i32
  }
}

</mosaic_0001>

<bundles_post_ra>
// kernel: tpu_custom_call.1
= control target key start
LH: loop header
LB: loop body
LE: loop exit
PB: predicated region body
PF: predicated region fallthrough
CT: control target
= control target key end

     0   :  { %10 = vsyncpa [#allocation3], 0  ;;  %s1159_s0 = inlined_call_operand.vmem [shape: f32[2,1,4,342], index: 0, kind: input, shape index: {}]   ;;  %s1160_s1 = inlined_call_operand.hbm [shape: f32[4,9], index: 1, kind: input, shape index: {}]   ;;  %s1161_s2 = inlined_call_operand.vmem [shape: f32[4,1], index: 2, kind: input, shape index: {}]   ;;  %s1162_s3 = inlined_call_operand.vmem [shape: f32[8,4], index: 3, kind: input, shape index: {}]   ;;  %s1163_s4 = inlined_call_operand.vmem [shape: f32[8,1], index: 4, kind: input, shape index: {}]   ;;  %s1164_s5 = inlined_call_operand.hbm [shape: f32[2,8,288], index: 5, kind: output, shape index: {}]  }
   0x1   :  { %11 = vsyncpa [#allocation4], 0 }
   0x2   :  { %13 = vsyncpa [#allocation4 + $0x1], 0  ;;  %s961_s18 = smov 0   ;;  %s963_s19 = smov 0  }
   0x3   :  { %s965_s20 = smov 0   ;;  %s967_s21 = smov 0  }
   0x4 LB: > { %s982_s22 = sadd.s32 4294967295, %s909_s21   ;;  %s724_s23 = sadd.s32 4294967294, %s909_s21   ;;  %s909_s21 = sphi %s967_s21, %s1172_s21   ;;  %s905_s20 = sphi %s965_s20, %s1171_s20   ;;  %s901_s19 = sphi %s963_s19, %s1170_s19   ;;  %s897_s18 = sphi %s961_s18, %s1169_s18  }
   0x5   : > { %s986_s24 = sadd.s32 1, %s909_s21   ;;  %s136_s25 = sadd.s32 1, %s905_s20 }
   0x6   : > { %s133_s26 = ssub.s32 %s909_s21, %s986_s24  ;;  %p146_p0 = scmp.ne.s32.totalorder %s905_s20, %s901_s19 }
   0x7   : > { %p134_p1 = scmp.eq.s32.totalorder %s133_s26, 0  ;;  %p147_p2 = scmp.eq.s32.totalorder %s982_s22, 1 }
   0x8   : > { %p152_p3 = scmp.ne.s32.totalorder %s901_s19, %s897_s18  ;;  %p153_p4 = scmp.eq.s32.totalorder %s724_s23, 1 }
   0x9   : > { %s997_s27 = scalar_select %p134_p1, %s905_s20, %s136_s25  }
   0xa   : > { %p999_p5 = por %p147_p2, %p146_p0  ;;  %p1003_p6 = por %p153_p4, %p152_p3 }
   0xb   : > { %p725_p7 = scmp.ge.s32.totalorder %s909_s21, 1  ;;  %p160_p8 = scmp.lt.s32.totalorder %s909_s21, 3 }
   0xc   : > { %s1166_s29 = scalar_select %p1003_p6, 1, 0 }
   0xd   : > { %p751_p9 = scmp.eq.s32.totalorder %s982_s22, 0  ;;  %p1010_p10 = pnand %p725_p7, %p160_p8 }
   0xe   : > { %s911_s6 = smov [#allocation2]  }
   0xf   : > { %s173_s7 = sshll.u32 %s911_s6, 4  ;;  %p743_p11 = pneg %p1010_p10  ;;  %s174_s7 = int_to_ptr.vmem [resolvable:$true] %s173_s7 }
  0x10   : > { %s830_s8 = scalar_lea.vmem %s174_s7, 64  ;;  %p838_p3 = scmp.lt.s32.totalorder %s174_s7, %s174_s7 }
  0x11   : > { %p744_p12 = pnand %p751_p9, %p743_p11  ;;  %p831_p0 = scmp.ne.s32.totalorder %s174_s7, %s830_s8 }
  0x12   : > { %p839_p4 = scmp.lt.s32.totalorder %s830_s8, %s830_s8 }
  0x13   : > { %p821_p13 = pneg %p744_p12 }
  0x14   : > { %p840_p6 = por %p839_p4, %p838_p3 }
  0x15   : > { %p833_p1 = pnand %p831_p0, %p821_p13 }
  0x17   : > { %p834_p2 = pneg %p833_p1 }
  0x19   : > { %p841_p7 = pnand %p840_p6, %p834_p2 }
  0x1b   : > { %844 = shalt.err (!%p841_p7)
}
  0x1c   : > { %746 = dma.hbm_to_vmem [thread:$0]  (!%p744_p12), %s1160_s1, 64, %s174_s7, [#allocation3]  }
  0x1d   : > { %203 = sbr.rel (%p1010_p10) target bundleno = 368 (0x170), region = 40 }
  0x22   : > { %888 = dma.done.wait (%p751_p9), [#allocation3], 64  }
  0x23   : > { %890 = vsyncadd (%p751_p9), [#allocation3], 4294967232  ;;  %v912_v0 = vmov 1   ;;  %v913_v1 = vmov 3   ;;  %v236_v2 = vld [vmem:[#allocation2] sm:$0xf]  ;;  %v253_v14 = vlaneseq }
  0x24   : > { %805 = vset.pattern.permute.xlu0 %v912_v0  ;;  %807 = vset.pattern.permute.xlu1 %v913_v1  ;;  %v914_v3 = vmov 2   ;;  %v915_v4 = vmov 4   ;;  %v916_v5 = vmov 5   ;;  %v917_v6 = vmov 6   ;;  %v237_v10 = vld [vmem:[%s1161_s2] sm:$0xf] }
  0x25   : > { %269 = vperm.xlu0 %805, %v236_v2   ;;  %335 = vperm.xlu1 %807, %v236_v2   ;;  %v918_v7 = vmov 7   ;;  %v919_v8 = vmov 0   ;;  %v920_v9 = vmov 8   ;;  %v1036_v11 = vld [vmem:[%s1162_s3] sm:$0xff]  ;;  %p231_p6 = scmp.lt.s32.totalorder %s982_s22, 1  ;;  %v1041_v16 = vshrl.u32 %v253_v14, 7 }
  0x26   : > { %v921_v12 = vmov 839922192   ;;  %s922_s26 = smov 127   ;;  %s923_s30 = smov 126   ;;  %vm290_vm0 = vcmask 1039360   ;;  %vm323_vm1 = vcmask 1031168  }
  0x27   : > { %s232_s15 = scalar_select %p231_p6, %s982_s22, 1  ;;  %v251_v13 = vunpack.c.l.s4 %v921_v12  ;;  %vm356_vm2 = vcmask 900096   ;;  %vm389_vm3 = vcmask 891904   ;;  %vm422_vm4 = vcmask 883712  }
  0x28   : > { %s924_s6 = smov 110   ;;  %s925_s7 = smov 109   ;;  %vm455_vm5 = vcmask 752640   ;;  %vm488_vm6 = vcmask 744448   ;;  %vm521_vm7 = vcmask 736256   ;;  %vm636_vm8 = vcmask 261120  }
  0x29   : > { %806 = vset.pattern.permute.xlu0 %v914_v3  ;;  %808 = vset.pattern.permute.xlu1 %v915_v4  ;;  %s735_s16 = smul.u32 12, %s232_s15  ;;  %v252_v15 = vunpack.c.0.s8 %v251_v13  ;;  %s926_s8 = smov 108  }
  0x2a   : > { %302 = vperm.xlu0 %806, %v236_v2   ;;  %368 = vperm.xlu1 %808, %v236_v2   ;;  %s927_s9 = smov 92   ;;  %s928_s10 = smov 91  }
  0x2b   : > { %s1046_s25 = scalar_lea.vmem %s1159_s0, %s735_s16  ;;  %v255_v17 = vsub.s32 %v252_v15, %v1041_v16  ;;  %s929_s11 = smov 90  }
  0x2c   : > { %v266_v18 = vld [vmem:[%s1046_s25] sm:$0xff]  ;;  %v267_v23 = vld [vmem:[%s1046_s25 + $0x8] sm:$0xf]  ;;  %s228_s14 = sand.u32 1, %s901_s19   ;;  %s736_s16 = smul.u32 384, %s982_s22 }
  0x2d   : > { %v300_v30 = vld [vmem:[%s1046_s25 + $0x8] sm:$0xf]  ;;  %s734_s15 = smul.u32 24, %s228_s14  ;;  %s639_s22 = scalar_lea.sflag [#allocation4], %s228_s14 }
  0x2e   : > { %809 = vset.pattern.permute.xlu1 %v916_v5  ;;  %810 = vset.pattern.permute.xlu0 %v917_v6  ;;  %v333_v36 = vld [vmem:[%s1046_s25 + $0x8] sm:$0xf] }
  0x2f   : > { %401 = vperm.xlu1 %809, %v236_v2   ;;  %434 = vperm.xlu0 %810, %v236_v2   ;;  %v245_v40 = vld [vmem:[%s1046_s25 + $0x8] sm:$0xf]  ;;  %s230_s17 = scalar_lea.vmem [#allocation5], %s734_s15 }
  0x30   : > { %v366_v43 = vld [vmem:[%s1046_s25 + $0x8] sm:$0xf]  ;;  %s653_s23 = sshll.u32 %s230_s17, 4  ;;  %s1118_s23 = int_to_ptr.vmem [resolvable:$true] %s653_s23 }
  0x31   : > { %v399_v46 = vld [vmem:[%s1046_s25 + $0x8] sm:$0xf] }
  0x32   : > { %v432_v55 = vld [vmem:[%s1046_s25 + $0x8] sm:$0xf] }
  0x33   : > { %811 = vset.pattern.permute.xlu1 %v918_v7  ;;  %813 = vset.pattern.permute.xlu0 %v919_v8  ;;  %v465_v59 = vld [vmem:[%s1046_s25 + $0x8] sm:$0xf] }
  0x34   : > { %467 = vperm.xlu1 %811, %v236_v2   ;;  %248 = vperm.xlu0 %813, %v236_v2   ;;  %v498_v62 = vld [vmem:[%s1046_s25 + $0x8] sm:$0xf] }
  0x38   : > { %812 = vset.pattern.permute.xlu1 %v920_v9  ;;  %815 = vset.pattern.permute.xlu0 %v912_v0 }
  0x39   : > { %500 = vperm.xlu1 %812, %v236_v2  }
  0x3d   : > { %814 = vset.pattern.permute.xlu1 %v919_v8 }
  0x3e   : > { %241 = vperm.xlu1 %814, %v237_v10   ;;  %v238_v10 = vld [vmem:[%s1163_s4] sm:$0xff] }
  0x42   : > { %536 = vperm.xlu1 %814, %v1036_v11  }
  0x46   : > { %816 = vset.pattern.permute.xlu1 %v914_v3 }
  0xa0   : > { %v270_v19 = vpop.permute.xlu0 %269  ;;  %v336_v20 = vpop.permute.xlu1 %335 }
  0xa1   : > { %v277_v21 = vrot.slane %v270_v19, %v255_v17  ;;  %v343_v25 = vrot.slane %v336_v20, %v255_v17 }
  0xa3   : > { %v1050_v22 = vmul.f32 %v277_v21, %v266_v18  ;;  %v280_v28 = vmul.f32 %v277_v21, %v267_v23  ;;  %v1056_v31 = vmul.f32 %v343_v25, %v266_v18  ;;  %v346_v39 = vmul.f32 %v343_v25, %v333_v36 }
  0xa5   : > { %284 = vrot.lane.b32.xlu1 %v1050_v22, %s922_s26  ;;  %v303_v24 = vpop.permute.xlu0 %302  ;;  %v369_v26 = vpop.permute.xlu1 %368  ;;  %v283_v3 = vcombine.high %v1050_v22, %v1050_v22  ;;  %v349_v5 = vcombine.high %v1056_v31, %v1056_v31 }
  0xa6   : > { %v310_v27 = vrot.slane %v303_v24, %v255_v17  ;;  %v376_v32 = vrot.slane %v369_v26, %v255_v17 }
  0xa8   : > { %v312_v29 = vmul.f32 %v310_v27, %v266_v18  ;;  %v313_v35 = vmul.f32 %v310_v27, %v300_v30  ;;  %v378_v38 = vmul.f32 %v376_v32, %v266_v18  ;;  %v379_v50 = vmul.f32 %v376_v32, %v366_v43 }
  0xa9   : > { %288 = vrot.lane.b32.xlu1 %v280_v28, %s922_s26 }
  0xaa   : > { %317 = vrot.lane.b32.xlu0 %v312_v29, %s923_s30  ;;  %v402_v33 = vpop.permute.xlu1 %401  ;;  %v435_v34 = vpop.permute.xlu0 %434  ;;  %v316_v63 = vcombine.high %v312_v29, %v312_v29  ;;  %v382_v2 = vcombine.high %v378_v38, %v378_v38 }
  0xab   : > { %v409_v37 = vrot.slane %v402_v33, %v255_v17  ;;  %v442_v47 = vrot.slane %v435_v34, %v255_v17 }
  0xad   : > { %350 = vrot.lane.b32.xlu1 %v1056_v31, %s924_s6  ;;  %v411_v44 = vmul.f32 %v409_v37, %v266_v18  ;;  %v412_v51 = vmul.f32 %v409_v37, %v399_v46  ;;  %v444_v53 = vmul.f32 %v442_v47, %v266_v18  ;;  %v445_v58 = vmul.f32 %v442_v47, %v432_v55 }
  0xae   : > { %321 = vrot.lane.b32.xlu0 %v313_v35, %s923_s30 }
  0xaf   : > { %v249_v41 = vpop.permute.xlu0 %248  ;;  %v468_v45 = vpop.permute.xlu1 %467  ;;  %v448_v4 = vcombine.high %v444_v53, %v444_v53  ;;  %v415_v7 = vcombine.high %v411_v44, %v411_v44 }
  0xb0   : > { %v256_v42 = vrot.slane %v249_v41, %v255_v17  ;;  %v475_v52 = vrot.slane %v468_v45, %v255_v17 }
  0xb1   : > { %354 = vrot.lane.b32.xlu1 %v346_v39, %s924_s6 }
  0xb2   : > { %383 = vrot.lane.b32.xlu0 %v378_v38, %s925_s7  ;;  %v1069_v48 = vmul.f32 %v266_v18, %v256_v42  ;;  %v1071_v49 = vmul.f32 %v256_v42, %v245_v40  ;;  %v477_v56 = vmul.f32 %v475_v52, %v266_v18  ;;  %v478_v61 = vmul.f32 %v475_v52, %v465_v59 }
  0xb4   : > { %v501_v54 = vpop.permute.xlu1 %500  ;;  %v481_v9 = vcombine.high %v477_v56, %v477_v56  ;;  %v261_v30 = vcombine.high %v1069_v48, %v1069_v48 }
  0xb5   : > { %416 = vrot.lane.b32.xlu1 %v411_v44, %s926_s8  ;;  %v508_v57 = vrot.slane %v501_v54, %v255_v17 }
  0xb6   : > { %387 = vrot.lane.b32.xlu0 %v379_v50, %s925_s7 }
  0xb7   : > { %v510_v60 = vmul.f32 %v508_v57, %v266_v18  ;;  %v511_v0 = vmul.f32 %v508_v57, %v498_v62 }
  0xb9   : > { %420 = vrot.lane.b32.xlu1 %v412_v51, %s926_s8  ;;  %v514_v6 = vcombine.high %v510_v60, %v510_v60  ;;  %v242_v12 = vpop.permute.xlu1 %241 }
  0xba   : > { %449 = vrot.lane.b32.xlu0 %v444_v53, %s927_s9  ;;  %v265_v26 = vadd.f32 %v1071_v49, %v242_v12  ;;  %v263_v33 = vadd.f32 %v1069_v48, %v242_v12  ;;  %v264_v35 = vadd.f32 %v261_v30, %v242_v12 }
  0xbd   : > { %482 = vrot.lane.b32.xlu1 %v477_v56, %s928_s10  ;;  %v1096_v13 = vpop.permute.xlu1 %536 }
  0xbe   : > { %453 = vrot.lane.b32.xlu0 %v445_v58, %s927_s9 }
  0xc1   : > { %486 = vrot.lane.b32.xlu1 %v478_v61, %s928_s10 }
  0xc2   : > { %515 = vrot.lane.b32.xlu0 %v510_v60, %s929_s11 }
  0xc5   : > { %319 = vrot.lane.b32.xlu1 %v316_v63, %s923_s30  ;;  %s1116_s30 = scalar_lea.hbm %s1164_s5, %s736_s16 }
  0xc6   : > { %519 = vrot.lane.b32.xlu0 %v511_v0, %s929_s11 }
  0xc9   : > { %385 = vrot.lane.b32.xlu1 %v382_v2, %s925_s7  ;;  %s930_s7 = smov [#allocation5]  }
  0xca   : > { %286 = vrot.lane.b32.xlu0 %v283_v3, %s922_s26 }
  0xcd   : > { %451 = vrot.lane.b32.xlu1 %v448_v4, %s927_s9 }
  0xce   : > { %352 = vrot.lane.b32.xlu0 %v349_v5, %s924_s6  ;;  %s845_s6 = scalar_lea.vmem %s1118_s23, 384 }
  0xcf   : > { %p846_p8 = scmp.ne.s32.totalorder %s1118_s23, %s845_s6 }
  0xd1   : > { %517 = vrot.lane.b32.xlu1 %v514_v6, %s929_s11  ;;  %p847_p9 = pnand %p846_p8, %p999_p5 }
  0xd2   : > { %418 = vrot.lane.b32.xlu0 %v415_v7, %s926_s8  ;;  %s849_s8 = sshll.u32 %s930_s7, 4  ;;  %s850_s8 = int_to_ptr.vmem [resolvable:$false] %s849_s8 }
  0xd3   : > { %p848_p10 = pneg %p847_p9  ;;  %s851_s9 = scalar_lea.vmem %s850_s8, 768 }
  0xd4   : > { %p852_p11 = scmp.lt.s32.totalorder %s1118_s23, %s850_s8  ;;  %p853_p12 = scmp.lt.s32.totalorder %s851_s9, %s845_s6 }
  0xd5   : > { %580 = vperm.xlu1 %816, %v1036_v11  }
  0xd6   : > { %484 = vrot.lane.b32.xlu0 %v481_v9, %s928_s10  ;;  %p854_p13 = por %p853_p12, %p852_p11 }
  0xd8   : > { %p855_p0 = pnand %p854_p13, %p848_p10 }
  0xd9   : > { %817 = vset.pattern.permute.xlu1 %v913_v1 }
  0xda   : > { %558 = vperm.xlu0 %815, %v1036_v11   ;;  %602 = vperm.xlu1 %817, %v1036_v11  }
  0xde   : > { %818 = vset.pattern.permute.xlu0 %v919_v8 }
  0xdf   : > { %625 = vperm.xlu0 %818, %v238_v10  }
 0x117   : > { %v285_v14 = vpop.permute.xlu1 %284 }
 0x11b   : > { %v289_v15 = vpop.permute.xlu1 %288 }
 0x11c   : > { %v318_v17 = vpop.permute.xlu0 %317  ;;  %v298_v28 = vadd.f32 %v289_v15, %v265_v26  ;;  %v585_v26 = vsub.s32 2, %v1041_v16 }
 0x11f   : > { %v351_v18 = vpop.permute.xlu1 %350 }
 0x120   : > { %v322_v19 = vpop.permute.xlu0 %321 }
 0x121   : > { %v331_v32 = vadd.f32 %v322_v19, %v298_v28 }
 0x123   : > { %v355_v1 = vpop.permute.xlu1 %354 }
 0x124   : > { %v384_v20 = vpop.permute.xlu0 %383  ;;  %v364_v37 = vadd.f32 %v355_v1, %v331_v32 }
 0x127   : > { %v417_v21 = vpop.permute.xlu1 %416 }
 0x128   : > { %v388_v22 = vpop.permute.xlu0 %387 }
 0x129   : > { %v397_v42 = vadd.f32 %v388_v22, %v364_v37 }
 0x12b   : > { %v421_v11 = vpop.permute.xlu1 %420 }
 0x12c   : > { %v450_v23 = vpop.permute.xlu0 %449  ;;  %v430_v53 = vadd.f32 %v421_v11, %v397_v42 }
 0x12f   : > { %v483_v24 = vpop.permute.xlu1 %482 }
 0x130   : > { %v454_v25 = vpop.permute.xlu0 %453 }
 0x131   : > { %v463_v59 = vadd.f32 %v454_v25, %v430_v53 }
 0x133   : > { %v487_v8 = vpop.permute.xlu1 %486 }
 0x134   : > { %v516_v27 = vpop.permute.xlu0 %515  ;;  %v496_v7 = vadd.f32 %v487_v8, %v463_v59 }
 0x137   : > { %v320_v29 = vpop.permute.xlu1 %319 }
 0x138   : > { %v520_v31 = vpop.permute.xlu0 %519  ;;  %v324_v43 = vsel %vm323_vm1, %v318_v17, %v320_v29  ;;  %v325_v44 = vsel %vm323_vm1, %v320_v29, %v322_v19 }
 0x13b   : > { %v386_v34 = vpop.permute.xlu1 %385 }
 0x13c   : > { %v287_v36 = vpop.permute.xlu0 %286  ;;  %v390_v54 = vsel %vm389_vm3, %v384_v20, %v386_v34  ;;  %v391_v55 = vsel %vm389_vm3, %v386_v34, %v388_v22 }
 0x13d   : > { %v291_v38 = vsel %vm290_vm0, %v285_v14, %v287_v36  ;;  %v292_v39 = vsel %vm290_vm0, %v287_v36, %v289_v15  ;;  %v529_v15 = vadd.f32 %v520_v31, %v496_v7 }
 0x13e   : > { %v296_v40 = vadd.f32 %v291_v38, %v263_v33  ;;  %v297_v41 = vadd.f32 %v292_v39, %v264_v35 }
 0x13f   : > { %v452_v48 = vpop.permute.xlu1 %451 }
 0x140   : > { %v329_v45 = vadd.f32 %v324_v43, %v296_v40  ;;  %v330_v46 = vadd.f32 %v325_v44, %v297_v41  ;;  %v353_v47 = vpop.permute.xlu0 %352  ;;  %v456_v0 = vsel %vm455_vm5, %v450_v23, %v452_v48  ;;  %v457_v2 = vsel %vm455_vm5, %v452_v48, %v454_v25 }
 0x141   : > { %v357_v49 = vsel %vm356_vm2, %v351_v18, %v353_v47  ;;  %v358_v50 = vsel %vm356_vm2, %v353_v47, %v355_v1  ;;  %v563_v25 = vsub.s32 1, %v1041_v16 }
 0x142   : > { %v362_v51 = vadd.f32 %v357_v49, %v329_v45  ;;  %v363_v52 = vadd.f32 %v358_v50, %v330_v46 }
 0x143   : > { %v518_v3 = vpop.permute.xlu1 %517 }
 0x144   : > { %v395_v56 = vadd.f32 %v390_v54, %v362_v51  ;;  %v396_v57 = vadd.f32 %v391_v55, %v363_v52  ;;  %v419_v58 = vpop.permute.xlu0 %418  ;;  %v522_v17 = vsel %vm521_vm7, %v516_v27, %v518_v3  ;;  %v523_v18 = vsel %vm521_vm7, %v518_v3, %v520_v31 }
 0x145   : > { %v423_v60 = vsel %vm422_vm4, %v417_v21, %v419_v58  ;;  %v424_v61 = vsel %vm422_vm4, %v419_v58, %v421_v11  ;;  %v532_v21 = vmax.f32 %v529_v15, 0.0  ;;  %v541_v11 = vsub.s32 0, %v1041_v16 }
 0x146   : > { %v428_v62 = vadd.f32 %v423_v60, %v395_v56  ;;  %v429_v63 = vadd.f32 %v424_v61, %v396_v57 }
 0x147   : > { %v550_v29 = vrot.slane %v532_v21, %v541_v11  ;;  %v572_v33 = vrot.slane %v532_v21, %v563_v25  ;;  %v594_v35 = vrot.slane %v532_v21, %v585_v26 }
 0x148   : > { %v461_v4 = vadd.f32 %v456_v0, %v428_v62  ;;  %v462_v5 = vadd.f32 %v457_v2, %v429_v63  ;;  %v485_v6 = vpop.permute.xlu0 %484 }
 0x149   : > { %v489_v9 = vsel %vm488_vm6, %v483_v24, %v485_v6  ;;  %v490_v10 = vsel %vm488_vm6, %v485_v6, %v487_v8  ;;  %v607_v24 = vsub.s32 3, %v1041_v16  ;;  %v553_v16 = vmul.f32 %v550_v29, %v1096_v13 }
 0x14a   : > { %v494_v12 = vadd.f32 %v489_v9, %v461_v4  ;;  %v495_v14 = vadd.f32 %v490_v10, %v462_v5 }
 0x14b   : > { %v616_v36 = vrot.slane %v532_v21, %v607_v24 }
 0x14c   : > { %v527_v19 = vadd.f32 %v522_v17, %v494_v12  ;;  %v528_v1 = vadd.f32 %v523_v18, %v495_v14 }
 0x14e   : > { %v530_v20 = vmax.f32 %v527_v19, 0.0  ;;  %v531_v22 = vmax.f32 %v528_v1, 0.0 }
 0x150   : > { %v581_v23 = vpop.permute.xlu1 %580  ;;  %v542_v8 = vrot.slane %v530_v20, %v541_v11  ;;  %v546_v28 = vrot.slane %v531_v22, %v541_v11  ;;  %v586_v27 = vrot.slane %v530_v20, %v585_v26  ;;  %v564_v30 = vrot.slane %v530_v20, %v563_v25 }
 0x151   : > { %v590_v31 = vrot.slane %v531_v22, %v585_v26  ;;  %v568_v32 = vrot.slane %v531_v22, %v563_v25  ;;  %v608_v44 = vrot.slane %v530_v20, %v607_v24  ;;  %v612_v45 = vrot.slane %v531_v22, %v607_v24 }
 0x152   : > { %v551_v37 = vmul.f32 %v542_v8, %v1096_v13  ;;  %v552_v40 = vmul.f32 %v546_v28, %v1096_v13  ;;  %v595_v43 = vmul.f32 %v586_v27, %v581_v23  ;;  %v597_v49 = vmul.f32 %v594_v35, %v581_v23 }
 0x153   : > { %v596_v47 = vmul.f32 %v590_v31, %v581_v23 }
 0x155   : > { %v559_v34 = vpop.permute.xlu0 %558  ;;  %v603_v39 = vpop.permute.xlu1 %602 }
 0x156   : > { %v573_v38 = vmul.f32 %v564_v30, %v559_v34  ;;  %v574_v41 = vmul.f32 %v568_v32, %v559_v34  ;;  %v575_v42 = vmul.f32 %v572_v33, %v559_v34  ;;  %v617_v51 = vmul.f32 %v608_v44, %v603_v39 }
 0x157   : > { %v618_v53 = vmul.f32 %v612_v45, %v603_v39  ;;  %v619_v54 = vmul.f32 %v616_v36, %v603_v39 }
 0x158   : > { %v576_v46 = vadd.f32 %v573_v38, %v551_v37  ;;  %v577_v50 = vadd.f32 %v574_v41, %v552_v40  ;;  %v578_v48 = vadd.f32 %v575_v42, %v553_v16 }
 0x15a   : > { %v598_v52 = vadd.f32 %v595_v43, %v576_v46  ;;  %v599_v55 = vadd.f32 %v596_v47, %v577_v50  ;;  %v600_v56 = vadd.f32 %v597_v49, %v578_v48  ;;  %v626_v13 = vpop.permute.xlu0 %625 }
 0x15c   : > { %v620_v57 = vadd.f32 %v617_v51, %v598_v52  ;;  %v621_v58 = vadd.f32 %v618_v53, %v599_v55  ;;  %v622_v59 = vadd.f32 %v619_v54, %v600_v56 }
 0x15e   : > { %v628_v60 = vadd.f32 %v626_v13, %v620_v57  ;;  %v629_v61 = vadd.f32 %v626_v13, %v621_v58  ;;  %v630_v62 = vadd.f32 %v626_v13, %v622_v59 }
 0x160   : > { %v631_v63 = vmax.f32 %v628_v60, 0.0  ;;  %v632_v0 = vmax.f32 %v629_v61, 0.0  ;;  %v633_v2 = vmax.f32 %v630_v62, 0.0 }
 0x162   : > { %634 = vst [vmem:[%s230_s17] sm:$0xff] %v631_v63  ;;  %635 = vst [vmem:[%s230_s17 + $0x8] sm:$0xff] %v632_v0 }
 0x163   : > { %637 = vst.msk [vmem:[%s230_s17 + $0x10] sm:$0xff] %vm636_vm8, %v633_v2 }
 0x164   : > { %858 = shalt.err (!%p855_p0)
}
 0x165   : > { %s859_s10 = scalar_lea.hbm %s1116_s30, 384  ;;  %s863_s13 = scalar_lea.hbm %s1164_s5, 768 }
 0x166   : > { %p860_p1 = scmp.ne.s32.totalorder %s1116_s30, %s859_s10  ;;  %p864_p4 = scmp.lt.s32.totalorder %s1116_s30, %s1164_s5 }
 0x167   : > { %p865_p7 = scmp.lt.s32.totalorder %s863_s13, %s859_s10 }
 0x168   : > { %p861_p2 = pnand %p860_p1, %p999_p5 }
 0x169   : > { %p866_p6 = por %p865_p7, %p864_p4 }
 0x16a   : > { %p862_p3 = pneg %p861_p2 }
 0x16c   : > { %p867_p8 = pnand %p866_p6, %p862_p3 }
 0x16e   : > { %870 = shalt.err (!%p867_p8)
}
 0x16f   : > { %741 = dma.vmem_to_hbm [thread:$0]  (%p999_p5), %s1118_s23, 384, %s1116_s30, %s639_s22  }
 0x170 PF: > { %p753_p9 = scmp.ge.s32.totalorder %s909_s21, 2  ;;  %s665_s16 = sand.u32 1, %s897_s18  }
 0x171   : > { %p1168_p10 = scmp.ne.s32.totalorder %s1166_s29, 0  ;;  %s666_s17 = scalar_lea.sflag [#allocation4], %s665_s16 }
 0x173   : > { %p748_p11 = pnand %p753_p9, %p1168_p10 }
 0x175   : > { %p749_p12 = pneg %p748_p11 }
 0x177   : > { %892 = dma.done.wait (%p749_p12), %s666_s17, 384  }
 0x178   : > { %894 = vsyncadd (%p749_p12), %s666_s17, 4294966912  ;;  %p16_p13 = scmp.ge.s32.totalorder %s986_s24, 4   ;;  %s1169_s18 = smov %s901_s19 }
 0x179   : > { %s1170_s19 = smov %s905_s20  ;;  %s1171_s20 = smov %s997_s27 }
 0x17a   : > { %s1172_s21 = smov %s986_s24  ;;  %18 = sbr.rel (!%p16_p13) target bundleno = 4 (0x4), region = 80 }
 0x17f   :  { %671 = vsyncpa [#allocation3], 1 }
 0x180   :  { %673 = vsyncpa [#allocation3 + $0x1], 1 }
 0x181   :  { %674 = vsyncpa [#allocation4], 1 }
 0x182   :  { %676 = vsyncpa [#allocation4 + $0x1], 1 }

</bundles_post_ra>
